<compile_context>
chip_gen: v6e
topology: v6e:2x2x1
jax: 0.10.0
libtpu: 0.0.40
codegen_flags: <defaults>
</compile_context>

<pallas_src>
import functools

import jax
import jax.numpy as jnp
from jax.experimental import pallas as pl
from jax.experimental.pallas import tpu as pltpu

_LANE = 128


def _round_up(v, m):
    return (v + m - 1) // m * m


def _vmem_budget_bytes():
    """Generation-aware VMEM budget (used as scoped limit and tiling budget)."""
    cap = 64 << 20  # conservative default: v7x per-TensorCore VMEM
    try:
        info = pltpu.get_tpu_info()
        cap_attr = getattr(info, "vmem_capacity_bytes", None)
        if cap_attr:
            cap = int(cap_attr)
    except Exception:
        pass
    # ~25% headroom for compiler internal scratch; cap at 96 MiB on 128 MiB
    # parts (v5e/v6e) and ~48 MiB on v7x.
    return int(min((cap * 3) // 4, 96 << 20))


# --------------------------------------------------------------------------
# Kernels
# --------------------------------------------------------------------------
def _resident_kernel(x_ref, w_ref, b_ref, o_ref):
    """Full-K dot against a VMEM-resident weight; one (tm, N) output tile."""
    acc = jnp.dot(x_ref[...], w_ref[...], preferred_element_type=jnp.float32)
    o_ref[...] = (acc + b_ref[...].astype(jnp.float32)).astype(o_ref.dtype)


def _tiled_kernel(x_ref, w_ref, b_ref, o_ref, acc_ref, *, k_total, tk):
    """One (tm, tn) output tile; K reduced over grid axis 2 (f32 accumulator)."""
    k = pl.program_id(2)
    x = x_ref[...]
    if k_total % tk != 0:  # static: only emitted when K is ragged
        # OOB K columns of the edge x block hold unspecified data; zero them so
        # that (masked x) * (zero-padded weight rows) contributes exactly 0.
        col = k * tk + jax.lax.broadcasted_iota(jnp.int32, x.shape, 1)
        x = jnp.where(col < k_total, x, jnp.zeros_like(x))
    prod = jnp.dot(x, w_ref[...], preferred_element_type=jnp.float32)

    @pl.when(k == 0)
    def _():
        acc_ref[...] = prod          # init with first partial product

    @pl.when(k != 0)
    def _():
        acc_ref[...] += prod

    @pl.when(k == pl.num_programs(2) - 1)
    def _():
        o_ref[...] = (acc_ref[...] +
                      b_ref[...].astype(jnp.float32)).astype(o_ref.dtype)


# --------------------------------------------------------------------------
# Dispatcher
# --------------------------------------------------------------------------
def _linear_pallas(x2d, weight, bias, *, compute_dtype=None, force_tiled=False,
                   max_tm=1024, max_tk=512, max_tn=512):
    """y = x2d @ weight + bias, x2d (M, K), weight (K, N), bias (N,)."""
    M, K = x2d.shape
    Kw, N = weight.shape
    assert Kw == K, (Kw, K)
    out_dtype = x2d.dtype
    if compute_dtype is not None:
        x2d = x2d.astype(compute_dtype)
        weight = weight.astype(compute_dtype)
    isz = jnp.dtype(x2d.dtype).itemsize
    sublane = 8 * max(1, 4 // isz)  # 8 for f32, 16 for bf16
    budget = _vmem_budget_bytes()
    bias2d = bias.reshape(1, N)

    # ---------------- weight-resident fast path ----------------
    w_bytes = K * N * isz
    if (not force_tiled) and w_bytes <= budget // 3:
        fixed = 2 * w_bytes + 2 * N * isz + (2 << 20)
        per_m = (2 * K + 2 * N) * isz + N * 4      # x/out double-buf + f32 acc
        avail = budget - fixed
        if avail >= per_m * sublane:
            tm = min(max_tm,
                     (avail // per_m) // sublane * sublane,
                     _round_up(M, sublane))
            tm = max(sublane, (tm // sublane) * sublane)
            if pl.cdiv(M, tm) == 1 and M > 2 * sublane:
                # Give the second v7x TensorCore work on the "parallel" axis.
                tm = max(sublane, _round_up((M + 1) // 2, sublane))
            grid_m = pl.cdiv(M, tm)
            return pl.pallas_call(
                _resident_kernel,
                out_shape=jax.ShapeDtypeStruct((M, N), out_dtype),
                grid_spec=pltpu.PrefetchScalarGridSpec(
                    num_scalar_prefetch=0,
                    grid=(grid_m,),
                    in_specs=[
                        pl.BlockSpec((tm, K), lambda i: (i, 0)),   # x rows
                        pl.BlockSpec((K, N), lambda i: (0, 0)),    # resident W
                        pl.BlockSpec((1, N), lambda i: (0, 0)),    # bias
                    ],
                    out_specs=pl.BlockSpec((tm, N), lambda i: (i, 0)),
                ),
                compiler_params=pltpu.CompilerParams(
                    dimension_semantics=("parallel",),
                    vmem_limit_bytes=budget,
                ),
            )(x2d, weight, bias2d)

    # ---------------- tiled fallback (weight streamed, K reduced) ----------------
    tn = min(_round_up(max_tn, _LANE), _round_up(N, _LANE))
    tk = min(_round_up(max_tk, _LANE), _round_up(K, _LANE))
    fixed = 2 * tk * tn * isz + 2 * tn * isz + (2 << 20)
    per_m = (2 * tk + 2 * tn) * isz + tn * 4
    avail = max(budget - fixed, per_m * sublane)
    tm = min(max_tm, (avail // per_m) // sublane * sublane, _round_up(M, sublane))
    tm = max(sublane, (tm // sublane) * sublane)

    # Only the (small) weight / bias are zero-padded; x and the output are
    # never copied: K-ragged x blocks are masked in-kernel and M/N-edge output
    # blocks rely on Pallas' masked partial-block writes.
    k_pad = _round_up(K, tk)
    n_pad = _round_up(N, tn)
    if k_pad != K or n_pad != N:
        weight = jnp.pad(weight, ((0, k_pad - K), (0, n_pad - N)))
    if n_pad != N:
        bias2d = jnp.pad(bias2d, ((0, 0), (0, n_pad - N)))

    grid = (pl.cdiv(M, tm), n_pad // tn, k_pad // tk)
    kernel = functools.partial(_tiled_kernel, k_total=K, tk=tk)
    return pl.pallas_call(
        kernel,
        out_shape=jax.ShapeDtypeStruct((M, N), out_dtype),
        grid_spec=pltpu.PrefetchScalarGridSpec(
            num_scalar_prefetch=0,
            grid=grid,
            in_specs=[
                pl.BlockSpec((tm, tk), lambda i, j, k: (i, k)),   # x tile
                pl.BlockSpec((tk, tn), lambda i, j, k: (k, j)),   # weight tile
                pl.BlockSpec((1, tn), lambda i, j, k: (0, j)),    # bias tile
            ],
            out_specs=pl.BlockSpec((tm, tn), lambda i, j, k: (i, j)),
            scratch_shapes=[pltpu.VMEM((tm, tn), jnp.float32)],
        ),
        compiler_params=pltpu.CompilerParams(
            dimension_semantics=("parallel", "parallel", "arbitrary"),
            vmem_limit_bytes=budget,
        ),
    )(x2d, weight, bias2d)


# --------------------------------------------------------------------------
# TimeDistributed(Linear) forward
# --------------------------------------------------------------------------
def time_distributed_linear(x, weight, bias, *, batch_first=False,
                            compute_dtype=None):
    """TimeDistributed(Linear) forward.

    x:      (..., in_features)  — typically (T, B, in_features)
    weight: (in_features, out_features)
    bias:   (out_features,)
    """
    out_features = weight.shape[1]

    if x.ndim <= 2:
        if x.ndim == 1:
            return _linear_pallas(x.reshape(1, -1), weight, bias,
                                  compute_dtype=compute_dtype).reshape(out_features)
        return _linear_pallas(x, weight, bias, compute_dtype=compute_dtype)

    # x_reshape = x.contiguous().view(-1, x.size(-1))
    in_features = x.shape[-1]
    x2d = x.reshape(-1, in_features)
    y2d = _linear_pallas(x2d, weight, bias, compute_dtype=compute_dtype)

    if batch_first:
        # y.view(x.size(0), -1, y.size(-1))
        return y2d.reshape(x.shape[0], -1, out_features)
    # y.view(-1, x.size(1), y.size(-1))
    return y2d.reshape(-1, x.shape[1], out_features)


if __name__ == "__main__":
    # ---- Test 1: the original small shape (T=8, B=2, in=32, out=64) ----
    T, B, IN, OUT = 8, 2, 32, 64
    key = jax.random.PRNGKey(0)
    kx, kw, kb = jax.random.split(key, 3)

    x = jax.random.normal(kx, (T, B, IN), dtype=jnp.float32)
    weight = jax.random.normal(kw, (IN, OUT), dtype=jnp.float32) * (1.0 / IN ** 0.5)
    bias = jax.random.normal(kb, (OUT,), dtype=jnp.float32) * 0.01

    fwd = jax.jit(functools.partial(time_distributed_linear, batch_first=False))
    y = fwd(x, weight, bias)
    jax.block_until_ready(y)
    assert y.shape == (T, B, OUT), y.shape
    y_ref = (x.reshape(-1, IN) @ weight + bias).reshape(T, B, OUT)
    assert jnp.allclose(y, y_ref, atol=1e-4, rtol=1e-4), "mismatch vs reference (test 1)"

    # ---- Test 2: non-aligned shapes + batch_first=True (M/N edges, resident path) ----
    T2, B2, IN2, OUT2 = 7, 3, 160, 200
    k2x, k2w, k2b = jax.random.split(jax.random.PRNGKey(1), 3)
    x2 = jax.random.normal(k2x, (T2, B2, IN2), dtype=jnp.float32)
    w2 = jax.random.normal(k2w, (IN2, OUT2), dtype=jnp.float32) * (1.0 / IN2 ** 0.5)
    b2 = jax.random.normal(k2b, (OUT2,), dtype=jnp.float32) * 0.01
    y2 = jax.jit(functools.partial(time_distributed_linear, batch_first=True))(x2, w2, b2)
    jax.block_until_ready(y2)
    assert y2.shape == (T2, B2, OUT2), y2.shape
    y2_ref = (x2.reshape(-1, IN2) @ w2 + b2).reshape(T2, B2, OUT2)
    assert jnp.allclose(y2, y2_ref, atol=1e-4, rtol=1e-4), "mismatch vs reference (test 2)"

    # ---- Test 3: force the tiled fallback with tiny tiles to exercise the
    #              K-reduction grid axis, in-kernel K masking and M/N edges ----
    k3x, k3w, k3b = jax.random.split(jax.random.PRNGKey(2), 3)
    x3 = jax.random.normal(k3x, (13, 300), dtype=jnp.float32)
    w3 = jax.random.normal(k3w, (300, 200), dtype=jnp.float32) * (1.0 / 300 ** 0.5)
    b3 = jax.random.normal(k3b, (200,), dtype=jnp.float32) * 0.01
    small_tiles = jax.jit(functools.partial(
        _linear_pallas, force_tiled=True, max_tm=8, max_tk=128, max_tn=128))
    y3 = small_tiles(x3, w3, b3)
    jax.block_until_ready(y3)
    y3_ref = x3 @ w3 + b3
    assert jnp.allclose(y3, y3_ref, atol=1e-4, rtol=1e-4), "mismatch vs reference (test 3)"

    print("KERNEL_OK")
</pallas_src>

<mosaic_0001>
module attributes {stable_mosaic.version = 11 : i64} {
  func.func @_resident_kernel(%arg0: i32, %arg1: memref<16x32xf32, #tpu.memory_space<vmem>>, %arg2: memref<32x64xf32, #tpu.memory_space<vmem>>, %arg3: memref<1x64xf32, #tpu.memory_space<vmem>>, %arg4: memref<16x64xf32, #tpu.memory_space<vmem>>) attributes {dimension_semantics = [#tpu.dimension_semantics<parallel>], iteration_bounds = array<i64: 1>, scalar_prefetch = 0 : i64, scratch_operands = 0 : i64, tpu.core_type = #tpu.core_type<tc>, window_params = [{transform_indices = @transform_0, window_bounds = array<i64: 16, 32>}, {pipeline_mode = #tpu.pipeline_mode<synchronous>, transform_indices = @transform_1, window_bounds = array<i64: 32, 64>}, {pipeline_mode = #tpu.pipeline_mode<synchronous>, transform_indices = @transform_2, window_bounds = array<i64: 1, 64>}, {transform_indices = @transform_3, window_bounds = array<i64: 16, 64>}]} {
    %c0 = arith.constant 0 : index
    %c0_0 = arith.constant 0 : index
    %0 = vector.load %arg1[%c0, %c0_0] : memref<16x32xf32, #tpu.memory_space<vmem>>, vector<16x32xf32>
    %c0_1 = arith.constant 0 : index
    %c0_2 = arith.constant 0 : index
    %1 = vector.load %arg2[%c0_1, %c0_2] : memref<32x64xf32, #tpu.memory_space<vmem>>, vector<32x64xf32>
    %cst = arith.constant dense<0.000000e+00> : vector<16x64xf32>
    %2 = tpu.matmul %0, %1, %cst {dimension_numbers = #tpu.dot_dimension_numbers<[1], [0], [0], [1], [0, 0, 1, 1], [], []>} : vector<16x32xf32>, vector<32x64xf32>, vector<16x64xf32> -> vector<16x64xf32>
    %c0_3 = arith.constant 0 : index
    %c0_4 = arith.constant 0 : index
    %3 = vector.load %arg3[%c0_3, %c0_4] : memref<1x64xf32, #tpu.memory_space<vmem>>, vector<1x64xf32>
    %4 = vector.broadcast %3 : vector<1x64xf32> to vector<16x64xf32>
    %5 = arith.addf %2, %4 : vector<16x64xf32>
    %c0_5 = arith.constant 0 : index
    %c0_6 = arith.constant 0 : index
    %6 = vector.load %arg4[%c0_5, %c0_6] : memref<16x64xf32, #tpu.memory_space<vmem>>, vector<16x64xf32>
    tpu.vector_store %arg4[%c0_5, %c0_6], %5 {strides = array<i32>} : memref<16x64xf32, #tpu.memory_space<vmem>>, vector<16x64xf32>,
    return
  }
  func.func @transform_0(%arg0: i32) -> (i32, i32) {
    %c0_i32 = arith.constant 0 : i32
    %c0_i32_0 = arith.constant 0 : i32
    return %arg0, %c0_i32 : i32, i32
  }
  func.func @transform_1(%arg0: i32) -> (i32, i32) {
    %c0_i32 = arith.constant 0 : i32
    %c0_i32_0 = arith.constant 0 : i32
    %c0_i32_1 = arith.constant 0 : i32
    return %c0_i32, %c0_i32_0 : i32, i32
  }
  func.func @transform_2(%arg0: i32) -> (i32, i32) {
    %c0_i32 = arith.constant 0 : i32
    %c0_i32_0 = arith.constant 0 : i32
    %c0_i32_1 = arith.constant 0 : i32
    return %c0_i32, %c0_i32_0 : i32, i32
  }
  func.func @transform_3(%arg0: i32) -> (i32, i32) {
    %c0_i32 = arith.constant 0 : i32
    %c0_i32_0 = arith.constant 0 : i32
    return %arg0, %c0_i32 : i32, i32
  }
}

</mosaic_0001>

<bundles_post_ra>
// kernel: time_distributed_linear.1
= control target key start
LH: loop header
LB: loop body
LE: loop exit
PB: predicated region body
PF: predicated region fallthrough
CT: control target
= control target key end

     0   :  { %8 = vsyncpa [#allocation3], 0  ;;  %s298_s0 = inlined_call_operand.hbm [shape: f32[16,32], index: 0, kind: input, shape index: {}]   ;;  %s299_s1 = inlined_call_operand.hbm [shape: f32[32,64], index: 1, kind: input, shape index: {}]   ;;  %s300_s2 = inlined_call_operand.vmem [shape: f32[1,64], index: 2, kind: input, shape index: {}]   ;;  %s301_s3 = inlined_call_operand.hbm [shape: f32[16,64], index: 3, kind: output, shape index: {}]  }
   0x1   :  { %9 = vsyncpa [#allocation6], 0 }
   0x2   :  { %10 = vsyncpa [#allocation4], 0  ;;  %s250_s12 = smov [#allocation2]  }
   0x3   :  { %s16_s13 = sshll.u32 %s250_s12, 4  ;;  %s17_s13 = int_to_ptr.vmem [resolvable:$true] %s16_s13 }
   0x4   :  { %s192_s14 = scalar_lea.vmem %s17_s13, 256  ;;  %p197_p1 = scmp.lt.s32.totalorder %s17_s13, %s17_s13 }
   0x5   :  { %p193_p0 = scmp.ne.s32.totalorder %s17_s13, %s192_s14  ;;  %p198_p2 = scmp.lt.s32.totalorder %s192_s14, %s192_s14 }
   0x7   :  { %p199_p3 = por %p198_p2, %p197_p1 }
   0x9   :  { %p200_p4 = pnand %p199_p3, %p193_p0 }
   0xb   :  { %203 = shalt.err (!%p200_p4)
}
   0xc   :  { %s251_s15 = smov 128   ;;  %s252_s16 = smov 8  }
   0xd   :  { %22 = dma.hbm_to_vmem [thread:$0]  %s298_s0, 256, %s17_s13, [#allocation3], %s251_s15, %s251_s15, %s252_s16  }
   0xe   :  { %s253_s19 = smov [#allocation5]  }
   0xf   :  { %s28_s20 = sshll.u32 %s253_s19, 4  ;;  %s29_s20 = int_to_ptr.vmem [resolvable:$true] %s28_s20 }
  0x10   :  { %s212_s21 = scalar_lea.vmem %s29_s20, 512  ;;  %p217_p6 = scmp.lt.s32.totalorder %s29_s20, %s29_s20 }
  0x11   :  { %p213_p5 = scmp.ne.s32.totalorder %s29_s20, %s212_s21  ;;  %p218_p7 = scmp.lt.s32.totalorder %s212_s21, %s212_s21 }
  0x13   :  { %p219_p8 = por %p218_p7, %p217_p6 }
  0x15   :  { %p220_p9 = pnand %p219_p8, %p213_p5 }
  0x17   :  { %223 = shalt.err (!%p220_p9)
}
  0x18   :  { %34 = dma.hbm_to_vmem [thread:$0]  %s299_s1, 512, %s29_s20, [#allocation6], %s251_s15, %s251_s15, %s252_s16  }
  0x19   :  { %244 = dma.done.wait [#allocation3], 256  }
  0x1a   :  { %245 = vsyncadd [#allocation3], 4294967040 }
  0x1b   :  { %246 = dma.done.wait [#allocation6], 512  }
  0x1c   :  { %247 = vsyncadd [#allocation6], 4294966784  ;;  %vm56_vm0 = vcmask 261120   ;;  %v48_v0 = vld [vmem:[#allocation5 + $0x18] sm:$0xff]  ;;  %v47_v1 = vld [vmem:[#allocation5 + $0x10] sm:$0xff]  ;;  %vm138_vm1 = vcmask 523264  }
  0x1d   :  { %168 = vmatprep.subr.mxu0 %v48_v0  ;;  %v43_v2 = vld [vmem:[#allocation2] sm:$0xff]  ;;  %v46_v3 = vld [vmem:[#allocation5 + $0x8] sm:$0xff]  ;;  %v45_v4 = vld [vmem:[#allocation5] sm:$0xff]  ;;  %s254_s24 = smov [#allocation7]  }
  0x1e   :  { %169 = vmatpush3.msra.mxu0 %v48_v0  ;;  %176 = vmatprep.mubr.msk.f32.mxu0 %vm56_vm0, %v43_v2  ;;  %v44_v5 = vld [vmem:[#allocation2 + $0x8] sm:$0xff]  ;;  %v159_v6 = vld [vmem:[%s300_s2] ss:$0 sm:$0xff]  ;;  %s146_s25 = sshll.u32 %s254_s24, 4  ;;  %s147_s25 = int_to_ptr.vmem [resolvable:$true] %s146_s25 }
  0x1f   :  { %170 = vmatprep.subr.mxu0 %v47_v1  ;;  %s224_s26 = scalar_lea.vmem %s147_s25, 256  ;;  %p229_p11 = scmp.lt.s32.totalorder %s147_s25, %s147_s25 }
  0x20   :  { %171 = vmatpush3.msra.mxu0 %v47_v1  ;;  %p225_p10 = scmp.ne.s32.totalorder %s147_s25, %s224_s26  ;;  %p230_p12 = scmp.lt.s32.totalorder %s224_s26, %s224_s26 }
  0x21   :  { %172 = vmatprep.subr.mxu0 %v46_v3 }
  0x22   :  { %173 = vmatpush3.msra.mxu0 %v46_v3  ;;  %p231_p13 = por %p230_p12, %p229_p11 }
  0x23   :  { %174 = vmatprep.subr.mxu0 %v45_v4 }
  0x24   :  { %175 = vmatpush3.msra.mxu0 %v45_v4  ;;  %p232_p0 = pnand %p231_p13, %p225_p10 }
  0x25   :  { %177 = vmatmul.mubr.msk.f32.vlgmr.msra.gmra.mxu0 %vm56_vm0, %v44_v5 }
  0xe5   :  { %v178_v7 = vpop.f32.mrf.mxu0 }
  0xe6   :  { %v135_v8 = vadd.f32 %v178_v7, %v159_v6 }
  0xe7   :  { %v129_v9 = vpop.f32.mrf.mxu0 }
  0xe8   :  { %v130_v10 = vadd.f32 %v159_v6, %v129_v9  ;;  %140 = vst.msk [vmem:[#allocation7 + $0x8] sm:$0xff] %vm138_vm1, %v135_v8 }
  0xea   :  { %139 = vst.msk [vmem:[#allocation7] sm:$0xff] %vm138_vm1, %v130_v10 }
  0xeb   :  { %235 = shalt.err (!%p232_p0)
}
  0xec   :  { %152 = dma.vmem_to_hbm [thread:$0]  %s147_s25, 256, %s301_s3, [#allocation4], %s251_s15, %s251_s15, %s252_s16  }
  0xed   :  { %248 = dma.done.wait [#allocation4], 256  }
  0xee   :  { %249 = vsyncadd [#allocation4], 4294967040 }
  0xef   :  { %156 = vsyncpa [#allocation3], 1 }
  0xf0   :  { %157 = vsyncpa [#allocation6], 1 }
  0xf1   :  { %158 = vsyncpa [#allocation4], 1 }

</bundles_post_ra>
